<compile_context>
chip_gen: v7x
topology: tpu7x:2x2x1
jax: 0.10.0
libtpu: 0.0.40
codegen_flags: <defaults>
</compile_context>

<pallas_src>
import functools

import numpy as np
import jax
import jax.numpy as jnp
from jax import lax
from jax.experimental import pallas as pl
from jax.experimental.pallas import tpu as pltpu

ETA = 0.01  # teacher/student learning rate (compile-time constant)


def _score_loss_kernel(x_ref, y_ref, w_ref, part_ref, *,
                       global_batch: int, tile_b: int, acc_rows: int,
                       needs_mask: bool):
    """One batch tile: partial_grad[acc_rows, D] = grouped sum of resid_i * x_i."""
    x = x_ref[...]                                    # [TB, D] native dtype
    y = y_ref[...].astype(jnp.float32)                # [TB, 1]
    w = w_ref[...].astype(x.dtype)                    # [1, D]

    if needs_mask:
        row = (lax.broadcasted_iota(jnp.int32, (tile_b, 1), 0)
               + pl.program_id(0) * tile_b)
        valid = row < global_batch                    # [TB, 1]
        # Zero both x and resid for padded rows so OOB garbage (even inf/NaN)
        # can never leak into the partial sums.
        x = jnp.where(valid, x, jnp.zeros_like(x))

    # Student forward: logits = <x_i, w> as a lane-axis reduction (no w.T,
    # no degenerate MXU matmul); multiply in native dtype, reduce in f32.
    logits = jnp.sum((x * w).astype(jnp.float32), axis=-1, keepdims=True)
    p = 0.5 * (jnp.tanh(0.5 * logits) + 1.0)          # stable sigmoid (EUP)
    resid = p - y                                     # [TB, 1] f32
    if needs_mask:
        resid = jnp.where(valid, resid, 0.0)

    # BCE-with-logits grad contribution; group-sum TB rows -> acc_rows rows
    # with pure vreg adds (the cross-sublane reduce is deferred to finalize).
    contrib = resid.astype(x.dtype) * x               # [TB, D] native dtype
    if acc_rows > 1:
        groups = tile_b // acc_rows
        partial = jnp.sum(
            contrib.reshape(groups, acc_rows, contrib.shape[-1])
                   .astype(jnp.float32),
            axis=0)                                   # [acc_rows, D] f32
    else:
        partial = jnp.sum(contrib.astype(jnp.float32), axis=0, keepdims=True)
    part_ref[...] = partial


def _vmem_capacity_bytes() -> int:
    try:
        info = pltpu.get_tpu_info()
        cap = int(getattr(info, "vmem_capacity_bytes", 0))
        if cap > 0:
            return cap
    except Exception:
        pass
    return 64 * 1024 * 1024   # conservative fallback (v7x per-TC VMEM)


def _choose_tile_b(batch: int, cap_rows: int):
    """Batch-tile size: prefer a multiple-of-8 divisor of `batch` (mask
    compiled out); otherwise fall back to a masked last tile."""
    cap_rows = int(max(8, cap_rows))
    if batch <= cap_rows:
        return batch, False                        # single full tile, no mask
    t = (min(cap_rows, batch) // 8) * 8
    # Only accept divisors that keep the tile reasonably large; otherwise the
    # per-grid-step overhead outweighs the (compile-time-gated) mask cost.
    lower = max(8, (t // 2) // 8 * 8)
    tt = t
    while tt >= lower:
        if batch % tt == 0:
            return tt, False
        tt -= 8
    return t, True


def score_loss(x, y, w, w_star, *, block_b: int = 1024):
    """Fused ScoreLoss forward.  x: [B, D], y: [B, 1] (or [B]), w/w*: [1, D]."""
    B, D = x.shape
    y2 = jnp.reshape(y, (B, 1))
    w2 = jnp.reshape(w, (1, D))
    itemsize = jnp.dtype(x.dtype).itemsize

    cap = _vmem_capacity_bytes()
    data_budget = int(cap * 0.55)                  # headroom for compiler scratch
    # Per batch-row VMEM: double-buffered X tile + transient f32 product tiles.
    bytes_per_row = D * (2 * itemsize + 8) + 64
    cap_rows = max(8, min(block_b, data_budget // bytes_per_row))
    tb, needs_mask = _choose_tile_b(B, cap_rows)
    grid = pl.cdiv(B, tb)
    acc_rows = 8 if tb % 8 == 0 else 1             # acc_rows == 1 only when grid == 1

    est = (2 * tb * D * itemsize                   # double-buffered X tiles
           + 2 * tb * D * 4                        # transient f32 product / masked copy
           + 4 * tb * 4                            # y tiles
           + 4 * acc_rows * D * 4                  # w + partial-output buffers
           + (2 << 20))                            # slack
    vmem_limit = int(min(max(est, 32 * 1024 * 1024), int(cap * 0.70)))

    kernel = functools.partial(
        _score_loss_kernel, global_batch=B, tile_b=tb,
        acc_rows=acc_rows, needs_mask=needs_mask)

    partials = pl.pallas_call(
        kernel,
        out_shape=jax.ShapeDtypeStruct((grid * acc_rows, D), jnp.float32),
        grid=(grid,),
        in_specs=[
            pl.BlockSpec((tb, D), lambda i: (i, 0)),   # X tile
            pl.BlockSpec((tb, 1), lambda i: (i, 0)),   # y tile
            pl.BlockSpec((1, D), lambda i: (0, 0)),    # w (grid-invariant)
        ],
        out_specs=pl.BlockSpec((acc_rows, D), lambda i: (i, 0)),
        compiler_params=pltpu.CompilerParams(
            dimension_semantics=("parallel",),
            vmem_limit_bytes=vmem_limit,
        ),
    )(x, y2, w2)

    # O(D) finalize in plain JAX (outside the kernel): tiny compared with the
    # streaming pass, and keeps the grid fully parallel (both v7x TCs busy).
    grad = jnp.sum(partials, axis=0) * jnp.float32(1.0 / B)          # [D]
    wf = w2.astype(jnp.float32).reshape(-1)
    wsf = jnp.reshape(w_star, (-1,)).astype(jnp.float32)
    difficulty = jnp.float32(ETA * ETA) * jnp.sum(grad * grad)
    usefulness = jnp.float32(ETA) * jnp.sum((wf - wsf) * grad)
    return difficulty - usefulness


def score_loss_ref(x, y, w, w_star):
    """Pure-JAX reference for the same computation."""
    x = x.astype(jnp.float32)
    y = jnp.reshape(y, (-1, 1)).astype(jnp.float32)
    w = jnp.reshape(w, (1, -1)).astype(jnp.float32)
    w_star = jnp.reshape(w_star, (1, -1)).astype(jnp.float32)
    logits = x @ w.T
    resid = jax.nn.sigmoid(logits) - y
    grad = (resid.T @ x) / x.shape[0]
    difficulty = (ETA * ETA) * jnp.sum(grad * grad)
    usefulness = ETA * jnp.sum((w - w_star) * grad)
    return difficulty - usefulness


if __name__ == "__main__":
    # Case 1: single tile (toy shape the module implies).
    kx, ky, kw, kws = jax.random.split(jax.random.PRNGKey(0), 4)
    B, D = 8, 128
    x = jax.random.normal(kx, (B, D), dtype=jnp.float32)
    y = jax.random.bernoulli(ky, 0.5, (B, 1)).astype(jnp.float32)
    w = 0.1 * jax.random.normal(kw, (1, D), dtype=jnp.float32)
    w_star = 0.1 * jax.random.normal(kws, (1, D), dtype=jnp.float32)
    out = jax.block_until_ready(score_loss(x, y, w, w_star))
    ref = jax.block_until_ready(score_loss_ref(x, y, w, w_star))
    np.testing.assert_allclose(np.asarray(out), np.asarray(ref),
                               rtol=1e-4, atol=1e-6)

    # Case 2: multi-tile fully-"parallel" grid where tb divides B exactly
    # (padding mask compiled out).
    kx2, ky2, kw2, kws2 = jax.random.split(jax.random.PRNGKey(1), 4)
    B2, D2 = 40, 256
    x2 = jax.random.normal(kx2, (B2, D2), dtype=jnp.float32)
    y2 = jax.random.bernoulli(ky2, 0.5, (B2, 1)).astype(jnp.float32)
    w2 = 0.1 * jax.random.normal(kw2, (1, D2), dtype=jnp.float32)
    ws2 = 0.1 * jax.random.normal(kws2, (1, D2), dtype=jnp.float32)
    out2 = jax.block_until_ready(score_loss(x2, y2, w2, ws2, block_b=16))
    ref2 = jax.block_until_ready(score_loss_ref(x2, y2, w2, ws2))
    np.testing.assert_allclose(np.asarray(out2), np.asarray(ref2),
                               rtol=1e-4, atol=1e-6)

    # Case 3: no exact divisor fits -> masked partial last tile.
    kx3, ky3, kw3, kws3 = jax.random.split(jax.random.PRNGKey(2), 4)
    B3, D3 = 36, 128
    x3 = jax.random.normal(kx3, (B3, D3), dtype=jnp.float32)
    y3 = jax.random.bernoulli(ky3, 0.5, (B3, 1)).astype(jnp.float32)
    w3 = 0.1 * jax.random.normal(kw3, (1, D3), dtype=jnp.float32)
    ws3 = 0.1 * jax.random.normal(kws3, (1, D3), dtype=jnp.float32)
    out3 = jax.block_until_ready(score_loss(x3, y3, w3, ws3, block_b=16))
    ref3 = jax.block_until_ready(score_loss_ref(x3, y3, w3, ws3))
    np.testing.assert_allclose(np.asarray(out3), np.asarray(ref3),
                               rtol=1e-4, atol=1e-6)

    # Case 4: bf16 activations (bf16 multiplies, f32 accumulation) -- loose
    # tolerance against the f32 reference.
    xb = x2.astype(jnp.bfloat16)
    wb = w2.astype(jnp.bfloat16)
    out4 = jax.block_until_ready(score_loss(xb, y2, wb, ws2, block_b=16))
    np.testing.assert_allclose(np.asarray(out4), np.asarray(ref2),
                               rtol=2e-1, atol=1e-3)

    # Equivalent of score_loss.cpu().detach().numpy() in the PyTorch module:
    _ = np.asarray(out)

    print("KERNEL_OK")
</pallas_src>

<mosaic_0001>
module attributes {stable_mosaic.version = 11 : i64} {
  func.func @_score_loss_kernel(%arg0: i32, %arg1: memref<8x128xf32, #tpu.memory_space<vmem>>, %arg2: memref<8x1xf32, #tpu.memory_space<vmem>>, %arg3: memref<1x128xf32, #tpu.memory_space<vmem>>, %arg4: memref<8x128xf32, #tpu.memory_space<vmem>>) attributes {dimension_semantics = [#tpu.dimension_semantics<parallel>], iteration_bounds = array<i64: 1>, scalar_prefetch = 0 : i64, scratch_operands = 0 : i64, tpu.core_type = #tpu.core_type<tc>, window_params = [{transform_indices = @transform_0, window_bounds = array<i64: 8, 128>}, {transform_indices = @transform_1, window_bounds = array<i64: 8, 1>}, {pipeline_mode = #tpu.pipeline_mode<synchronous>, transform_indices = @transform_2, window_bounds = array<i64: 1, 128>}, {transform_indices = @transform_3, window_bounds = array<i64: 8, 128>}]} {
    %c0 = arith.constant 0 : index
    %c0_0 = arith.constant 0 : index
    %0 = vector.load %arg1[%c0, %c0_0] : memref<8x128xf32, #tpu.memory_space<vmem>>, vector<8x128xf32>
    %c0_1 = arith.constant 0 : index
    %c0_2 = arith.constant 0 : index
    %1 = vector.load %arg2[%c0_1, %c0_2] : memref<8x1xf32, #tpu.memory_space<vmem>>, vector<8x1xf32>
    %c0_3 = arith.constant 0 : index
    %c0_4 = arith.constant 0 : index
    %2 = vector.load %arg3[%c0_3, %c0_4] : memref<1x128xf32, #tpu.memory_space<vmem>>, vector<1x128xf32>
    %3 = vector.broadcast %2 : vector<1x128xf32> to vector<8x128xf32>
    %4 = arith.mulf %0, %3 : vector<8x128xf32>
    %cst = arith.constant dense<0.000000e+00> : vector<8xf32>
    %5 = vector.multi_reduction <add>, %4, %cst [1] : vector<8x128xf32> to vector<8xf32>
    %6 = vector.shape_cast %5 : vector<8xf32> to vector<8x1xf32>
    %cst_5 = arith.constant 5.000000e-01 : f32
    %7 = vector.broadcast %cst_5 : f32 to vector<8x1xf32>
    %8 = arith.mulf %7, %6 : vector<8x1xf32>
    %9 = math.tanh %8 : vector<8x1xf32>
    %cst_6 = arith.constant 1.000000e+00 : f32
    %10 = vector.broadcast %cst_6 : f32 to vector<8x1xf32>
    %11 = arith.addf %9, %10 : vector<8x1xf32>
    %cst_7 = arith.constant 5.000000e-01 : f32
    %12 = vector.broadcast %cst_7 : f32 to vector<8x1xf32>
    %13 = arith.mulf %12, %11 : vector<8x1xf32>
    %14 = arith.subf %13, %1 : vector<8x1xf32>
    %15 = vector.broadcast %14 : vector<8x1xf32> to vector<8x128xf32>
    %16 = arith.mulf %15, %0 : vector<8x128xf32>
    %17 = vector.shape_cast %16 : vector<8x128xf32> to vector<1x8x128xf32>
    %cst_8 = arith.constant dense<0.000000e+00> : vector<8x128xf32>
    %18 = vector.multi_reduction <add>, %17, %cst_8 [0] : vector<1x8x128xf32> to vector<8x128xf32>
    %c0_9 = arith.constant 0 : index
    %c0_10 = arith.constant 0 : index
    %19 = vector.load %arg4[%c0_9, %c0_10] : memref<8x128xf32, #tpu.memory_space<vmem>>, vector<8x128xf32>
    tpu.vector_store %arg4[%c0_9, %c0_10], %18 {strides = array<i32>} : memref<8x128xf32, #tpu.memory_space<vmem>>, vector<8x128xf32>,
    return
  }
  func.func @transform_0(%arg0: i32) -> (i32, i32) {
    %c0_i32 = arith.constant 0 : i32
    %c0_i32_0 = arith.constant 0 : i32
    return %arg0, %c0_i32 : i32, i32
  }
  func.func @transform_1(%arg0: i32) -> (i32, i32) {
    %c0_i32 = arith.constant 0 : i32
    %c0_i32_0 = arith.constant 0 : i32
    return %arg0, %c0_i32 : i32, i32
  }
  func.func @transform_2(%arg0: i32) -> (i32, i32) {
    %c0_i32 = arith.constant 0 : i32
    %c0_i32_0 = arith.constant 0 : i32
    %c0_i32_1 = arith.constant 0 : i32
    return %c0_i32, %c0_i32_0 : i32, i32
  }
  func.func @transform_3(%arg0: i32) -> (i32, i32) {
    %c0_i32 = arith.constant 0 : i32
    %c0_i32_0 = arith.constant 0 : i32
    return %arg0, %c0_i32 : i32, i32
  }
}

</mosaic_0001>

<bundles_post_ra>
// kernel: tpu_custom_call.1
= control target key start
LH: loop header
LB: loop body
LE: loop exit
PB: predicated region body
PF: predicated region fallthrough
CT: control target
= control target key end

     0   :  { %s127_s0 = inlined_call_operand.vmem [shape: f32[8,128], index: 0, kind: input, shape index: {}]   ;;  %s128_s1 = inlined_call_operand.vmem [shape: f32[8,1], index: 1, kind: input, shape index: {}]   ;;  %s129_s2 = inlined_call_operand.vmem [shape: f32[1,128], index: 2, kind: input, shape index: {}]   ;;  %s130_s3 = inlined_call_operand.hbm [shape: f32[8,128], index: 3, kind: output, shape index: {}]  }
   0x1   :  { %v15_v0 = vld [vmem:[%s127_s0] sm:$0xff] }
   0x2   :  { %v54_v1 = vld [vmem:[%s129_s2] ss:$0 sm:$0xff] }
   0x3   :  { %8 = vsyncpa [#allocation3], 0  ;;  %v24_v2 = vmul.f32 %v54_v1, %v15_v0  ;;  %v84_v3 = vmov 0   ;;  %v16_v8 = vld [vmem:[%s128_s1] sm:$0xff]  ;;  %s85_s0 = smov [#allocation2]  }
   0x4   :  { %57 = vset.pattern.permute.xlu0 %v84_v3  ;;  %s46_s18 = sshll.u32 %s85_s0, 4  ;;  %s47_s18 = int_to_ptr.vmem [resolvable:$true] %s46_s18 }
   0x5   :  { %25 = vadd.xlane.f32.xlu0 %v24_v2  ;;  %s60_s2 = scalar_lea.vmem %s47_s18, 128  ;;  %p65_p1 = scmp.lt.s32.totalorder %s47_s18, %s47_s18 }
   0x6   :  { %p61_p0 = scmp.ne.s32.totalorder %s47_s18, %s60_s2  ;;  %p66_p2 = scmp.lt.s32.totalorder %s60_s2, %s60_s2 }
   0x8   :  { %p67_p3 = por %p66_p2, %p65_p1 }
   0xa   :  { %p68_p4 = pnand %p67_p3, %p61_p0 }
  0x92   :  { %v26_v4 = vpop.xlane.xlu0 %25 }
  0x93   :  { %v27_v5 = vmul.f32 0.5, %v26_v4 }
  0x95   :  { %58 = vtanh.f32 %v27_v5 }
  0x9f   :  { %v59_v6 = vpop.eup %58 }
  0xa0   :  { %v29_v7 = vadd.f32 1.0, %v59_v6 }
  0xa2   :  { %v30_v9 = vmul.f32 0.5, %v29_v7 }
  0xa4   :  { %v31_v10 = vsub.f32 %v30_v9, %v16_v8 }
  0xa6   :  { %34 = vperm.xlu0 %57, %v31_v10  }
 0x125   :  { %v35_v11 = vpop.permute.xlu0 %34 }
 0x126   :  { %v37_v12 = vmul.f32 %v35_v11, %v15_v0 }
 0x128   :  { %39 = vst [vmem:[#allocation2] sm:$0xff] %v37_v12 }
 0x129   :  { %71 = shalt.err (!%p68_p4)
}
 0x12a   :  { %s72_s1 = scalar_lea.hbm %s130_s3, 128 }
 0x12b   :  { %p73_p5 = scmp.ne.s32.totalorder %s130_s3, %s72_s1  ;;  %p76_p6 = scmp.lt.u32.totalorder %s72_s1, %s130_s3 }
 0x12d   :  { %p78_p7 = pnand %p76_p6, %p73_p5 }
 0x12f   :  { %81 = shalt.err (!%p78_p7)
}
 0x130   :  { %49 = dma.vmem_to_hbm [thread:$0]  %s47_s18, 128, %s130_s3, [#allocation3]  }
 0x131   :  { %82 = dma.done.wait [#allocation3], 128  }
 0x132   :  { %83 = vsyncadd [#allocation3], 4294967168 }
 0x133   :  { %53 = vsyncpa [#allocation3], 1 }

</bundles_post_ra>
